<compile_context>
chip_gen: v5e
topology: v5e:2x2
jax: 0.10.0
libtpu: 0.0.40
codegen_flags: <defaults>
</compile_context>

<pallas_src>
import jax
import jax.numpy as jnp
from jax import lax
from jax.experimental import pallas as pl
from jax.experimental.pallas import tpu as pltpu


def _round_up(x, m):
    return ((x + m - 1) // m) * m


def _make_kernel(*, n_rows, tn, p_real, p_pad, needs_row_mask, single_tile):
    """Builds the per-(batch, N-tile) kernel body.

    n_rows: valid rows per batch entry (after any megacore split of N).
    """

    def kernel(temp_ref, feat_ref, centers_ref, proxy_ref, attn_ref):
        # temp_ref:    (1, 1)             SMEM f32
        # feat_ref:    (1, TN, C_pad)     VMEM, input dtype
        # centers_ref: (P_pad, C_pad)     VMEM, input dtype (constant index_map)
        # proxy_ref:   (1, P_pad, C_pad)  VMEM f32, resident across the N axis
        # attn_ref:    (1, TN, P_pad)     VMEM, attention dtype
        t = pl.program_id(1)

        f = feat_ref[0]                               # (TN, C_pad)
        if needs_row_mask:
            # Cheap (TN, 1) row mask.  Zeroing the *features* (not just attn)
            # guarantees stale rows in the padded tail contribute exactly 0 to
            # the proxy accumulation (no 0 x Inf/NaN hazard).
            rows = lax.broadcasted_iota(jnp.int32, (tn, 1), 0) + t * tn
            f = jnp.where(rows < n_rows, f, jnp.zeros_like(f))

        c = centers_ref[...]                          # (P_pad, C_pad)
        inv_temp = 1.0 / temp_ref[0, 0]               # one scalar divide/step

        # similarity = f @ c^T -> (TN, P_pad): contract C on the MXU, f32
        # accumulation, no transpose materialized.
        sim = lax.dot_general(
            f, c, (((1,), (1,)), ((), ())),
            preferred_element_type=jnp.float32) * inv_temp

        if p_pad != p_real:
            # Padded proxy columns must not enter the softmax denominator.
            cols = lax.broadcasted_iota(jnp.int32, (1, p_pad), 1)
            sim = jnp.where(cols < p_real, sim, jnp.float32(-1e30))

        # Numerically stable softmax over the proxy axis.
        m = jnp.max(sim, axis=-1, keepdims=True)
        e = jnp.exp(sim - m)
        denom = jnp.sum(e, axis=-1, keepdims=True)
        # Exact reciprocal of the (TN, 1) column + multiply instead of a full
        # (TN, P_pad) divide (keeps 1e-5-level accuracy).
        attn = e * pl.reciprocal(denom, approx=False)

        attn_ref[0] = attn.astype(attn_ref.dtype)

        # proxy partial = attn^T @ f -> (P_pad, C_pad): contract TN (dim 0 of
        # both operands), no explicit transpose.
        partial = lax.dot_general(
            attn.astype(f.dtype), f, (((0,), (0,)), ((), ())),
            preferred_element_type=jnp.float32)

        if single_tile:
            proxy_ref[0] = partial
        else:
            @pl.when(t == 0)
            def _():
                proxy_ref[...] = jnp.zeros_like(proxy_ref)

            proxy_ref[0] = proxy_ref[0] + partial

    return kernel


def simple_proxy_collector(features, proxy_centers, temperature, *,
                           attn_dtype=None, tn_cap=None):
    """features: [B, N, C], proxy_centers: [P, C], temperature: scalar (> 0).

    Returns (proxy_features [B, P, C], attention_weights [B, N, P]) in the
    features dtype (attention dtype can be overridden via `attn_dtype`).
    """
    B, N, C = features.shape
    P, C2 = proxy_centers.shape
    assert C == C2
    out_dtype = features.dtype
    attn_dtype = jnp.dtype(out_dtype if attn_dtype is None else attn_dtype)

    # ---- v7x megacore helper: with B == 1 a ("parallel", "arbitrary") grid
    # would feed only one TensorCore, so view N as two half-batches (a free,
    # contiguous reshape); per-half proxy partials are summed afterwards.
    split = 2 if (B == 1 and N % 2 == 0 and N >= 16) else 1
    b_eff, n_eff = B * split, N // split
    feats = features.reshape(b_eff, n_eff, C)

    # ---- Lane-dense padding: make P (attention lanes) and C (feature lanes)
    # multiples of 128.  Zero padding is numerically exact for both dots;
    # padded proxy columns are masked before the softmax inside the kernel.
    c_pad = _round_up(C, 128)
    p_pad = _round_up(P, 128)
    if c_pad != C:
        feats = jnp.pad(feats, ((0, 0), (0, 0), (0, c_pad - C)))
    centers = proxy_centers
    if c_pad != C or p_pad != P:
        centers = jnp.pad(proxy_centers, ((0, p_pad - P), (0, c_pad - C)))

    # ---- TN from a per-generation VMEM budget (inputs/outputs are
    # double-buffered by the Pallas pipeline).
    try:
        vmem_cap = pltpu.get_tpu_info().vmem_capacity_bytes
    except Exception:
        vmem_cap = 64 * 1024 * 1024        # assume the smallest (v7x) VMEM
    vmem_limit = min(int(vmem_cap * 0.75), 100 * 1024 * 1024)
    budget = vmem_limit - 4 * 1024 * 1024  # headroom for Mosaic scratch

    dt_b = jnp.dtype(feats.dtype).itemsize
    at_b = attn_dtype.itemsize
    fixed = 2 * p_pad * c_pad * dt_b       # centers (constant index, buffered)
    fixed += 2 * p_pad * c_pad * 4         # resident f32 proxy output block
    per_row = 2 * c_pad * dt_b + 2 * p_pad * at_b   # features in + attn out
    tn_budget = max(8, ((budget - fixed) // per_row) // 8 * 8)
    tn_budget = min(tn_budget, 4096)
    if tn_cap is not None:
        tn_budget = min(tn_budget, max(8, (tn_cap // 8) * 8))

    if n_eff <= tn_budget:
        tn, n_tiles = n_eff, 1             # full dim: any N is a legal block
    else:
        tn = tn_budget                     # multiple of 8
        n_tiles = pl.cdiv(n_eff, tn)
    needs_row_mask = (n_eff % tn) != 0

    temp_arr = jnp.asarray(temperature, jnp.float32).reshape(1, 1)

    out_shapes = (
        jax.ShapeDtypeStruct((b_eff, p_pad, c_pad), jnp.float32),  # proxy partials
        jax.ShapeDtypeStruct((b_eff, n_eff, p_pad), attn_dtype),   # attention
    )

    grid_spec = pltpu.PrefetchScalarGridSpec(
        num_scalar_prefetch=0,
        grid=(b_eff, n_tiles),
        in_specs=[
            pl.BlockSpec(memory_space=pltpu.MemorySpace.SMEM),       # temperature
            pl.BlockSpec((1, tn, c_pad), lambda b, n: (b, n, 0)),    # features
            # Constant index_map -> fetched once; single-buffering it
            # (pipeline_mode=pl.Buffered(1)) would save p_pad*c_pad*dt bytes of
            # VMEM but is omitted for lowering robustness.
            pl.BlockSpec((p_pad, c_pad), lambda b, n: (0, 0)),       # centers
        ],
        out_specs=[
            pl.BlockSpec((1, p_pad, c_pad), lambda b, n: (b, 0, 0)),  # proxy acc
            pl.BlockSpec((1, tn, p_pad), lambda b, n: (b, n, 0)),     # attention
        ],
    )

    kernel = _make_kernel(n_rows=n_eff, tn=tn, p_real=P, p_pad=p_pad,
                          needs_row_mask=needs_row_mask,
                          single_tile=(n_tiles == 1))

    proxy_partial, attn_pad = pl.pallas_call(
        kernel,
        out_shape=out_shapes,
        grid_spec=grid_spec,
        compiler_params=pltpu.CompilerParams(
            dimension_semantics=("parallel", "arbitrary"),
            vmem_limit_bytes=vmem_limit),
    )(temp_arr, feats, centers)

    # Undo the megacore split and the lane padding.
    proxy = proxy_partial.reshape(B, split, p_pad, c_pad).sum(axis=1)
    proxy = proxy[:, :P, :C].astype(out_dtype)
    attn = attn_pad.reshape(B, N, p_pad)
    if p_pad != P:
        attn = attn[:, :, :P]
    return proxy, attn


def _reference(features, proxy_centers, temperature):
    sim = jnp.einsum("bnc,pc->bnp", features, proxy_centers) / temperature
    attn = jax.nn.softmax(sim, axis=-1)
    proxy = jnp.einsum("bnp,bnc->bpc", attn, features)
    return proxy, attn


if __name__ == "__main__":
    key = jax.random.PRNGKey(0)
    k_feat, k_centers, k_feat2, k_feat3 = jax.random.split(key, 4)

    # --- primary small-shape test (single N tile per batch) ------------------
    B, N, d_model, num_proxies = 2, 128, 32, 32
    features = jax.random.normal(k_feat, (B, N, d_model), dtype=jnp.float32)
    proxy_centers = 0.02 * jax.random.normal(
        k_centers, (num_proxies, d_model), dtype=jnp.float32)
    temperature = jnp.float32(1.0)

    proxy_features, attention_weights = simple_proxy_collector(
        features, proxy_centers, temperature)
    jax.block_until_ready((proxy_features, attention_weights))

    proxy_ref, attn_ref = _reference(features, proxy_centers, temperature)
    assert proxy_features.shape == (B, num_proxies, d_model)
    assert attention_weights.shape == (B, N, num_proxies)
    assert jnp.allclose(attention_weights, attn_ref, atol=1e-5, rtol=1e-5)
    assert jnp.allclose(proxy_features, proxy_ref, atol=1e-5, rtol=1e-5)

    # --- multi-tile + masked-tail test (N accumulator + row-mask path) -------
    N2 = 600                                 # 3 tiles of 256, last one partial
    features2 = jax.random.normal(k_feat2, (B, N2, d_model), dtype=jnp.float32)
    proxy2, attn2 = simple_proxy_collector(
        features2, proxy_centers, temperature, tn_cap=256)
    jax.block_until_ready((proxy2, attn2))
    proxy2_ref, attn2_ref = _reference(features2, proxy_centers, temperature)
    assert jnp.allclose(attn2, attn2_ref, atol=1e-5, rtol=1e-5)
    assert jnp.allclose(proxy2, proxy2_ref, atol=1e-5, rtol=1e-5)

    # --- B == 1 megacore-split path (N viewed as two half-batches) -----------
    features3 = jax.random.normal(k_feat3, (1, 256, d_model), dtype=jnp.float32)
    proxy3, attn3 = simple_proxy_collector(
        features3, proxy_centers, temperature, tn_cap=64)
    jax.block_until_ready((proxy3, attn3))
    proxy3_ref, attn3_ref = _reference(features3, proxy_centers, temperature)
    assert jnp.allclose(attn3, attn3_ref, atol=1e-5, rtol=1e-5)
    assert jnp.allclose(proxy3, proxy3_ref, atol=1e-5, rtol=1e-5)

    print("KERNEL_OK")
</pallas_src>

<mosaic_0001>
module attributes {stable_mosaic.version = 11 : i64} {
  func.func @kernel(%arg0: i32, %arg1: i32, %arg2: memref<1x1xf32, #tpu.memory_space<smem>>, %arg3: memref<1x128x128xf32, #tpu.memory_space<vmem>>, %arg4: memref<128x128xf32, #tpu.memory_space<vmem>>, %arg5: memref<1x128x128xf32, #tpu.memory_space<vmem>>, %arg6: memref<1x128x128xf32, #tpu.memory_space<vmem>>) attributes {dimension_semantics = [#tpu.dimension_semantics<parallel>, #tpu.dimension_semantics<arbitrary>], iteration_bounds = array<i64: 2, 1>, scalar_prefetch = 0 : i64, scratch_operands = 0 : i64, tpu.core_type = #tpu.core_type<tc>, window_params = [{transform_indices = @transform_0, window_bounds = array<i64: 1, 1>}, {transform_indices = @transform_1, window_bounds = array<i64: 1, 128, 128>}, {pipeline_mode = #tpu.pipeline_mode<synchronous>, transform_indices = @transform_2, window_bounds = array<i64: 128, 128>}, {transform_indices = @transform_3, window_bounds = array<i64: 1, 128, 128>}, {transform_indices = @transform_4, window_bounds = array<i64: 1, 128, 128>}]} {
    %c0 = arith.constant 0 : index
    %c0_0 = arith.constant 0 : index
    %c0_1 = arith.constant 0 : index
    %0 = vector.load %arg3[%c0, %c0_0, %c0_1] : memref<1x128x128xf32, #tpu.memory_space<vmem>>, vector<1x128x128xf32>
    %1 = vector.shape_cast %0 : vector<1x128x128xf32> to vector<128x128xf32>
    %c0_2 = arith.constant 0 : index
    %c0_3 = arith.constant 0 : index
    %2 = vector.load %arg4[%c0_2, %c0_3] : memref<128x128xf32, #tpu.memory_space<vmem>>, vector<128x128xf32>
    %c0_4 = arith.constant 0 : index
    %c0_5 = arith.constant 0 : index
    %3 = memref.load %arg2[%c0_4, %c0_5] : memref<1x1xf32, #tpu.memory_space<smem>>
    %cst = arith.constant 1.000000e+00 : f32
    %4 = arith.divf %cst, %3 : f32
    %cst_6 = arith.constant dense<0.000000e+00> : vector<128x128xf32>
    %5 = tpu.matmul %1, %2, %cst_6 {dimension_numbers = #tpu.dot_dimension_numbers<[1], [1], [0], [0], [0, 0, 1, 0], [], []>} : vector<128x128xf32>, vector<128x128xf32>, vector<128x128xf32> -> vector<128x128xf32>
    %6 = vector.broadcast %4 : f32 to vector<128x128xf32>
    %7 = arith.mulf %5, %6 : vector<128x128xf32>
    %8 = tpu.iota {dimensions = array<i32: 1>} : vector<1x128xi32>
    %c32_i32 = arith.constant 32 : i32
    %9 = vector.broadcast %c32_i32 : i32 to vector<1x128xi32>
    %10 = arith.cmpi slt, %8, %9 : vector<1x128xi32>
    %cst_7 = arith.constant -1.000000e+30 : f32
    %11 = vector.shape_cast %10 : vector<1x128xi1> to vector<1x128xi1>
    %12 = vector.broadcast %11 : vector<1x128xi1> to vector<128x128xi1>
    %13 = vector.broadcast %cst_7 : f32 to vector<128x128xf32>
    %14 = arith.select %12, %7, %13 : vector<128x128xi1>, vector<128x128xf32>
    %cst_8 = arith.constant dense<0xFF800000> : vector<128xf32>
    %15 = vector.multi_reduction <maximumf>, %14, %cst_8 [1] : vector<128x128xf32> to vector<128xf32>
    %16 = vector.shape_cast %15 : vector<128xf32> to vector<128x1xf32>
    %17 = vector.broadcast %16 : vector<128x1xf32> to vector<128x128xf32>
    %18 = arith.subf %14, %17 : vector<128x128xf32>
    %19 = math.exp %18 : vector<128x128xf32>
    %cst_9 = arith.constant dense<0.000000e+00> : vector<128xf32>
    %20 = vector.multi_reduction <add>, %19, %cst_9 [1] : vector<128x128xf32> to vector<128xf32>
    %21 = vector.shape_cast %20 : vector<128xf32> to vector<128x1xf32>
    %22 = tpu.reciprocal %21 : vector<128x1xf32> -> vector<128x1xf32>
    %23 = vector.broadcast %22 : vector<128x1xf32> to vector<128x128xf32>
    %24 = arith.mulf %19, %23 : vector<128x128xf32>
    %c0_10 = arith.constant 0 : index
    %c0_11 = arith.constant 0 : index
    %c0_12 = arith.constant 0 : index
    %25 = vector.load %arg6[%c0_10, %c0_11, %c0_12] : memref<1x128x128xf32, #tpu.memory_space<vmem>>, vector<1x128x128xf32>
    %26 = vector.shape_cast %25 : vector<1x128x128xf32> to vector<128x128xf32>
    %27 = vector.shape_cast %24 : vector<128x128xf32> to vector<1x128x128xf32>
    tpu.vector_store %arg6[%c0_10, %c0_11, %c0_12], %27 {strides = array<i32>} : memref<1x128x128xf32, #tpu.memory_space<vmem>>, vector<1x128x128xf32>,
    %cst_13 = arith.constant dense<0.000000e+00> : vector<128x128xf32>
    %28 = tpu.matmul %24, %1, %cst_13 {dimension_numbers = #tpu.dot_dimension_numbers<[0], [0], [1], [1], [0, 1, 1, 1], [], []>} : vector<128x128xf32>, vector<128x128xf32>, vector<128x128xf32> -> vector<128x128xf32>
    %c0_14 = arith.constant 0 : index
    %c0_15 = arith.constant 0 : index
    %c0_16 = arith.constant 0 : index
    %29 = vector.load %arg5[%c0_14, %c0_15, %c0_16] : memref<1x128x128xf32, #tpu.memory_space<vmem>>, vector<1x128x128xf32>
    %30 = vector.shape_cast %29 : vector<1x128x128xf32> to vector<128x128xf32>
    %31 = vector.shape_cast %28 : vector<128x128xf32> to vector<1x128x128xf32>
    tpu.vector_store %arg5[%c0_14, %c0_15, %c0_16], %31 {strides = array<i32>} : memref<1x128x128xf32, #tpu.memory_space<vmem>>, vector<1x128x128xf32>,
    return
  }
  func.func @transform_0(%arg0: i32, %arg1: i32) -> (i32, i32) {
    %c0_i32 = arith.constant 0 : i32
    %c0_i32_0 = arith.constant 0 : i32
    %c0_i32_1 = arith.constant 0 : i32
    return %c0_i32, %c0_i32_0 : i32, i32
  }
  func.func @transform_1(%arg0: i32, %arg1: i32) -> (i32, i32, i32) {
    %c0_i32 = arith.constant 0 : i32
    %c0_i32_0 = arith.constant 0 : i32
    return %arg0, %arg1, %c0_i32 : i32, i32, i32
  }
  func.func @transform_2(%arg0: i32, %arg1: i32) -> (i32, i32) {
    %c0_i32 = arith.constant 0 : i32
    %c0_i32_0 = arith.constant 0 : i32
    %c0_i32_1 = arith.constant 0 : i32
    return %c0_i32, %c0_i32_0 : i32, i32
  }
  func.func @transform_3(%arg0: i32, %arg1: i32) -> (i32, i32, i32) {
    %c0_i32 = arith.constant 0 : i32
    %c0_i32_0 = arith.constant 0 : i32
    %c0_i32_1 = arith.constant 0 : i32
    return %arg0, %c0_i32, %c0_i32_0 : i32, i32, i32
  }
  func.func @transform_4(%arg0: i32, %arg1: i32) -> (i32, i32, i32) {
    %c0_i32 = arith.constant 0 : i32
    %c0_i32_0 = arith.constant 0 : i32
    return %arg0, %arg1, %c0_i32 : i32, i32, i32
  }
}

</mosaic_0001>

<bundles_post_ra>
// kernel: tpu_custom_call.1
= control target key start
LH: loop header
LB: loop body
LE: loop exit
PB: predicated region body
PF: predicated region fallthrough
CT: control target
= control target key end

     0   :  { %s2226_s0 = inlined_call_operand.<no memory space> [shape: f32[1,1], index: 0, kind: input, shape index: {}]   ;;  %s2227_s1 = inlined_call_operand.hbm [shape: f32[2,128,128], index: 1, kind: input, shape index: {}]   ;;  %s2228_s2 = inlined_call_operand.hbm [shape: f32[128,128], index: 2, kind: input, shape index: {}]   ;;  %s2229_s3 = inlined_call_operand.hbm [shape: f32[2,128,128], index: 3, kind: output, shape index: {0}]   ;;  %s2230_s4 = inlined_call_operand.hbm [shape: f32[2,128,128], index: 4, kind: output, shape index: {1}]  }
   0x1   :  { %2232 = sst [smem:[#allocation15_spill]] %s2228_s2 }
   0x2   :  { %10 = sst [smem:[#allocation2]] %s2226_s0 }
   0x3   :  { %11 = vsyncpa [#allocation4], 0 }
   0x4   :  { %13 = vsyncpa [#allocation4 + $0x1], 0 }
   0x5   :  { %14 = vsyncpa [#allocation7], 0 }
   0x6   :  { %15 = vsyncpa [#allocation5], 0 }
   0x7   :  { %17 = vsyncpa [#allocation5 + $0x1], 0 }
   0x8   :  { %18 = vsyncpa [#allocation10], 0 }
   0x9   :  { %20 = vsyncpa [#allocation10 + $0x1], 0  ;;  %s1521_s17 = smov 0   ;;  %s1523_s18 = smov 0  }
   0xa   :  { %s1525_s19 = smov 0   ;;  %s1527_s20 = smov 0  }
   0xb   :  { %s1529_s21 = smov 0   ;;  %s1531_s22 = smov 0  }
   0xc LB: > { %s1070_s0 = sadd.s32 4294967295, %s1486_s22   ;;  %s1071_s23 = sadd.s32 4294967294, %s1486_s22   ;;  %s1486_s22 = sphi %s1531_s22, %s26_s22   ;;  %s1482_s21 = sphi %s1529_s21, %s2270_s21   ;;  %s1478_s20 = sphi %s1527_s20, %s2269_s20   ;;  %s1474_s19 = sphi %s1525_s19, %s2268_s19   ;;  %s1470_s18 = sphi %s1523_s18, %s2267_s18   ;;  %s1466_s17 = sphi %s1521_s17, %s2266_s17  }
   0xd   : > { %p81_p0 = scmp.ne.s32.totalorder %s1470_s18, %s1466_s17  ;;  %p1555_p1 = scmp.eq.s32.totalorder %s1070_s0, 0 }
   0xe   : > { %p1559_p2 = scmp.eq.s32.totalorder %s1070_s0, 1  ;;  %p132_p3 = scmp.eq.s32.totalorder %s1071_s23, 1 }
   0xf   : > { %p1565_p4 = por %p1555_p1, %p81_p0  ;;  %p1072_p5 = scmp.ge.s32.totalorder %s1486_s22, 1 }
  0x10   : > { %p1570_p6 = por %p132_p3, %p81_p0  ;;  %p167_p7 = scmp.lt.s32.totalorder %s1486_s22, 3 }
  0x11   : > { %s2237_s2 = sld [smem:[#allocation15_spill]]  ;;  %s1488_s6 = smov [#allocation6]  }
  0x12   : > { %p1578_p8 = pnand %p1072_p5, %p167_p7  ;;  %s183_s7 = sshll.u32 %s1488_s6, 4  ;;  %s184_s7 = int_to_ptr.vmem [resolvable:$true] %s183_s7 }
  0x13   : > { %p1074_p11 = scmp.ge.s32.totalorder %s1486_s22, 2  ;;  %s2231_s8 = smov 128  }
  0x14   : > { %p1170_p9 = pneg %p1578_p8  ;;  %s1490_s9 = smov 8  }
  0x15   : > { %s38_s10 = sadd.s32 1, %s1482_s21  ;;  %s68_s11 = sadd.s32 1, %s1474_s19 }
  0x16   : > { %p1171_p10 = pnand %p1170_p9, %p1555_p1  ;;  %p40_p12 = scmp.ge.s32.totalorder %s38_s10, 2 }
  0x17   : > { %s181_s30 = sshll.u32 %s2237_s2, 4  ;;  %p75_p13 = scmp.ne.s32.totalorder %s1474_s19, %s1470_s18  ;;  %s182_s30 = int_to_ptr.hbm [resolvable:$true] %s181_s30 }
  0x18   : > { %1173 = dma.hbm_to_vmem [thread:$0]  (!%p1171_p10), %s182_s30, 2048, %s184_s7, [#allocation7], %s2231_s8, %s2231_s8, %s1490_s9  }
  0x19   : > { %p76_p0 = scmp.eq.s32.totalorder %s1486_s22, 0  ;;  %s2272_s10 = smov (%p40_p12, %s38_s10), 0 }
  0x1a   : > { %p1603_p5 = por %p1559_p2, %p75_p13  ;;  %s63_s14 = ssub.s32 %s1482_s21, %s2272_s10 }
  0x1b   : > { %p1597_p3 = por %p76_p0, %p75_p13  ;;  %p1186_p7 = scmp.lt.s32.totalorder %s1486_s22, 2 }
  0x1c   : > { %p66_p9 = scmp.eq.s32.totalorder %s63_s14, 0  ;;  %s197_s15 = sand.u32 1, %s1474_s19  }
  0x1d   : > { %s1075_s16 = sshll.u32 %s197_s15, 7  ;;  %s1091_s23 = sshll.u32 %s1482_s21, 7 }
  0x1e   : > { %s1612_s0 = scalar_select %p66_p9, %s1474_s19, %s68_s11  }
  0x1f   : > { %s208_s30 = scalar_lea.hbm %s2227_s1, %s1091_s23  ;;  %s201_s6 = scalar_lea.vmem [#allocation3], %s1075_s16 }
  0x20   : > { %s211_s7 = sshll.u32 %s201_s6, 4  ;;  %s209_s25 = sshll.u32 %s208_s30, 4  ;;  %s212_s7 = int_to_ptr.vmem [resolvable:$true] %s211_s7  ;;  %s210_s25 = int_to_ptr.hbm [resolvable:$true] %s209_s25 }
  0x21   : > { %p1175_p2 = pnand %p1186_p7, %p1597_p3  ;;  %s198_s8 = scalar_lea.sflag [#allocation4], %s197_s15 }
  0x22   : > { %s2241_s2 = smov 128   ;;  %223 = sbr.rel (%p1578_p8) target bundleno = 917 (0x395), region = 32 }
  0x23   : > { %1177 = dma.hbm_to_vmem [thread:$0]  (!%p1175_p2), %s210_s25, 2048, %s212_s7, %s198_s8, %s2241_s2, %s2241_s2, %s1490_s9  }
  0x24   : > { %s1626_s11 = sand.u32 (!%p1578_p8), 1, %s1470_s18  }
  0x25   : > { %s1629_s14 = sshll.u32 (!%p1578_p8), %s1626_s11, 7  ;;  %s226_s16 = scalar_lea.sflag (!%p1578_p8), [#allocation4], %s1626_s11 }
  0x26   : > { %s1633_s12 = scalar_lea.vmem (!%p1578_p8), [#allocation3], %s1629_s14 }
  0x27   : > { %1449 = dma.done.wait (%p1565_p4), %s226_s16, 2048  }
  0x28   : > { %1451 = vsyncadd (%p1565_p4), %s226_s16, 4294965248 }
  0x29   : > { %1453 = dma.done.wait (%p1555_p1), [#allocation7], 2048  }
  0x2a   : > { %1455 = vsyncadd (%p1555_p1), [#allocation7], 4294965248  ;;  %v298_v0 = vld [vmem:[#allocation6 + $0x78] sm:$0xff]  ;;  %v297_v1 = vld [vmem:[#allocation6 + $0x70] sm:$0xff]  ;;  %s299_s2 = sld [smem:[#allocation2]]  ;;  %v398_v43 = vlaneseq  ;;  %s1832_s26 = scalar_lea.vmem [#allocation9], %s1629_s14 }
  0x2b   : > { %316 = vmatpush.xpose.msra.mxu0 %v298_v0  ;;  %1094 = vmatpush.xpose.msra.mxu2 %v298_v0  ;;  %v296_v2 = vld [vmem:[#allocation6 + $0x68] sm:$0xff]  ;;  %v295_v3 = vld [vmem:[#allocation6 + $0x60] sm:$0xff]  ;;  %v294_v4 = vld [vmem:[#allocation6 + $0x58] sm:$0xff]  ;;  %s2144_s5 = scalar_lea.vmem [#allocation8], %s1629_s14  ;;  %s1092_s8 = sshll.u32 %s1478_s20, 7 }
  0x2c   : > { %1095 = vmatpush.xpose.msra.mxu3 %v298_v0  ;;  %v293_v5 = vld [vmem:[#allocation6 + $0x50] sm:$0xff]  ;;  %v292_v6 = vld [vmem:[#allocation6 + $0x48] sm:$0xff]  ;;  %v291_v7 = vld [vmem:[#allocation6 + $0x40] sm:$0xff]  ;;  %v1695_v44 = vand.u32 127, %v398_v43  ;;  %s936_s23 = scalar_lea.hbm %s2230_s4, %s1092_s8  ;;  %s937_s28 = sshll.u32 %s1832_s26, 4  ;;  %s938_s28 = int_to_ptr.vmem [resolvable:$true] %s937_s28 }
  0x2d   : > { %v290_v8 = vld [vmem:[#allocation6 + $0x38] sm:$0xff]  ;;  %v289_v9 = vld [vmem:[#allocation6 + $0x30] sm:$0xff]  ;;  %v288_v10 = vld [vmem:[#allocation6 + $0x28] sm:$0xff]  ;;  %s939_s29 = sshll.u32 %s936_s23, 4  ;;  %s906_s30 = scalar_lea.sflag [#allocation10], %s1626_s11  ;;  %s940_s29 = int_to_ptr.hbm [resolvable:$true] %s939_s29 }
  0x2e   : > { %v287_v11 = vld [vmem:[#allocation6 + $0x20] sm:$0xff]  ;;  %v286_v12 = vld [vmem:[#allocation6 + $0x18] sm:$0xff]  ;;  %v285_v13 = vld [vmem:[#allocation6 + $0x10] sm:$0xff]  ;;  %vm400_vm4 = vcmp.lt.s32.totalorder %v1695_v44, 32  ;;  %s1382_s6 = sshra.s32 %s940_s29, 4  ;;  %s1388_s16 = scalar_lea.hbm %s2230_s4, 256  ;;  %s1383_s6 = int_to_ptr.hbm [resolvable:$true] %s1382_s6 }
  0x2f   : > { %317 = vmatpush.xpose.msra.mxu0 %v297_v1  ;;  %1096 = vmatpush.xpose.msra.mxu2 %v297_v1  ;;  %v284_v14 = vld [vmem:[#allocation6 + $0x8] sm:$0xff]  ;;  %v1644_v15 = vld [vmem:[%s1633_s12 + $0x78] sm:$0xff]  ;;  %v283_v16 = vld [vmem:[#allocation6] sm:$0xff]  ;;  %s1384_s7 = scalar_lea.hbm %s1383_s6, 128  ;;  %p1389_p10 = scmp.lt.s32.totalorder %s1383_s6, %s2230_s4 }
  0x30   : > { %1097 = vmatpush.xpose.msra.mxu3 %v297_v1  ;;  %1126 = vmatpush.msra.mxu1 %v1644_v15  ;;  %v281_v17 = vld [vmem:[%s1633_s12 + $0x70] sm:$0xff]  ;;  %v1649_v18 = vld [vmem:[%s1633_s12] sm:$0xff]  ;;  %v1652_v19 = vld [vmem:[%s1633_s12 + $0x28] sm:$0xff]  ;;  %v300_v30 = vstv %s299_s2  ;;  %p1385_p1 = scmp.ne.s32.totalorder %s1383_s6, %s1384_s7  ;;  %p1390_p12 = scmp.lt.s32.totalorder %s1388_s16, %s1384_s7 }
  0x31   : > { %v279_v20 = vld [vmem:[%s1633_s12 + $0x60] sm:$0xff]  ;;  %v280_v21 = vld [vmem:[%s1633_s12 + $0x68] sm:$0xff]  ;;  %v273_v23 = vld [vmem:[%s1633_s12 + $0x30] sm:$0xff]  ;;  %1242 = vrcp.f32 %v300_v30  ;;  %v312_v35 = vand.u32 2147483648, %v300_v30  ;;  %vm306_vm0 = vweird.f32 %v300_v30  ;;  %v310_v37 = vand.u32 2147483647, %v300_v30 }
  0x32   : > { %1128 = vmatpush.msra.mxu1 %v281_v17  ;;  %v1661_v22 = vld [vmem:[%s1633_s12 + $0x8] sm:$0xff]  ;;  %v1666_v24 = vld [vmem:[%s1633_s12 + $0x58] sm:$0xff]  ;;  %v1670_v25 = vld [vmem:[%s1633_s12 + $0x50] sm:$0xff]  ;;  %p1386_p4 = pnand %p1385_p1, %p1603_p5  ;;  %p1391_p13 = por %p1390_p12, %p1389_p10 }
  0x33   : > { %318 = vmatpush.xpose.msra.mxu0 %v296_v2  ;;  %1098 = vmatpush.xpose.msra.mxu2 %v296_v2  ;;  %v276_v26 = vld [vmem:[%s1633_s12 + $0x48] sm:$0xff]  ;;  %v269_v27 = vld [vmem:[%s1633_s12 + $0x10] sm:$0xff]  ;;  %v274_v28 = vld [vmem:[%s1633_s12 + $0x38] sm:$0xff]  ;;  %v313_v39 = vor.u32 1.1754944e-38, %v312_v35  ;;  %vm311_vm3 = vcmp.eq.f32.partialorder %v310_v37, 8.507059e+37 }
  0x34   : > { %1099 = vmatpush.xpose.msra.mxu3 %v296_v2  ;;  %1130 = vmatpush.msra.mxu1 %v280_v21  ;;  %v275_v29 = vld [vmem:[%s1633_s12 + $0x40] sm:$0xff]  ;;  %v270_v31 = vld [vmem:[%s1633_s12 + $0x18] sm:$0xff]  ;;  %p1387_p8 = pneg %p1386_p4 }
  0x35   : > { %v271_v32 = vld [vmem:[%s1633_s12 + $0x20] sm:$0xff] }
  0x36   : > { %1132 = vmatpush.msra.mxu1 %v279_v20  ;;  %p1392_p0 = pnand %p1391_p13, %p1387_p8 }
  0x37   : > { %319 = vmatpush.xpose.msra.mxu0 %v295_v3  ;;  %1100 = vmatpush.xpose.msra.mxu2 %v295_v3  ;;  %v1243_v33 = vpop.eup %1242 }
  0x38   : > { %1101 = vmatpush.xpose.msra.mxu3 %v295_v3  ;;  %1134 = vmatpush.msra.mxu1 %v1666_v24  ;;  %v302_v34 = vmul.f32 %v1243_v33, %v300_v30  ;;  %vm307_vm1 = vweird.f32 %v1243_v33 }
  0x39   : > { %vm308_vm2 = vmor %vm306_vm0, %vm307_vm1 }
  0x3a   : > { %1136 = vmatpush.msra.mxu1 %v1670_v25  ;;  %v303_v36 = vsub.f32 1.0, %v302_v34 }
  0x3b   : > { %320 = vmatpush.xpose.msra.mxu0 %v294_v4  ;;  %1102 = vmatpush.xpose.msra.mxu2 %v294_v4 }
  0x3c   : > { %1103 = vmatpush.xpose.msra.mxu3 %v294_v4  ;;  %1138 = vmatpush.msra.mxu1 %v276_v26  ;;  %v304_v38 = vmul.f32 %v1243_v33, %v303_v36 }
  0x3e   : > { %1140 = vmatpush.msra.mxu1 %v275_v29  ;;  %v305_v40 = vadd.f32 %v1243_v33, %v304_v38 }
  0x3f   : > { %321 = vmatpush.xpose.msra.mxu0 %v293_v5  ;;  %1104 = vmatpush.xpose.msra.mxu2 %v293_v5 }
  0x40   : > { %1105 = vmatpush.xpose.msra.mxu3 %v293_v5  ;;  %1142 = vmatpush.msra.mxu1 %v274_v28  ;;  %v309_v41 = vsel %vm308_vm2, %v1243_v33, %v305_v40 }
  0x41   : > { %v314_v42 = vsel %vm311_vm3, %v313_v39, %v309_v41 }
  0x42   : > { %1144 = vmatpush.msra.mxu1 %v273_v23  ;;  %1158 = vpush %v314_v42 }
  0x43   : > { %322 = vmatpush.xpose.msra.mxu0 %v292_v6  ;;  %1106 = vmatpush.xpose.msra.mxu2 %v292_v6 }
  0x44   : > { %1107 = vmatpush.xpose.msra.mxu3 %v292_v6  ;;  %1146 = vmatpush.msra.mxu1 %v1652_v19 }
  0x46   : > { %1148 = vmatpush.msra.mxu1 %v271_v32 }
  0x47   : > { %323 = vmatpush.xpose.msra.mxu0 %v291_v7  ;;  %1108 = vmatpush.xpose.msra.mxu2 %v291_v7 }
  0x48   : > { %1109 = vmatpush.xpose.msra.mxu3 %v291_v7  ;;  %1150 = vmatpush.msra.mxu1 %v270_v31 }
  0x4a   : > { %1152 = vmatpush.msra.mxu1 %v269_v27 }
  0x4b   : > { %324 = vmatpush.xpose.msra.mxu0 %v290_v8  ;;  %1110 = vmatpush.xpose.msra.mxu2 %v290_v8 }
  0x4c   : > { %1111 = vmatpush.xpose.msra.mxu3 %v290_v8  ;;  %1154 = vmatpush.msra.mxu1 %v1661_v22 }
  0x4e   : > { %1156 = vmatpush.msra.mxu1 %v1649_v18 }
  0x4f   : > { %325 = vmatpush.xpose.msra.mxu0 %v289_v9  ;;  %1112 = vmatpush.xpose.msra.mxu2 %v289_v9 }
  0x50   : > { %1113 = vmatpush.xpose.msra.mxu3 %v289_v9 }
  0x53   : > { %326 = vmatpush.xpose.msra.mxu0 %v288_v10  ;;  %1114 = vmatpush.xpose.msra.mxu2 %v288_v10 }
  0x54   : > { %1115 = vmatpush.xpose.msra.mxu3 %v288_v10 }
  0x57   : > { %327 = vmatpush.xpose.msra.mxu0 %v287_v11  ;;  %1116 = vmatpush.xpose.msra.mxu2 %v287_v11 }
  0x58   : > { %1117 = vmatpush.xpose.msra.mxu3 %v287_v11 }
  0x5b   : > { %328 = vmatpush.xpose.msra.mxu0 %v286_v12  ;;  %1118 = vmatpush.xpose.msra.mxu2 %v286_v12 }
  0x5c   : > { %1119 = vmatpush.xpose.msra.mxu3 %v286_v12 }
  0x5f   : > { %329 = vmatpush.xpose.msra.mxu0 %v285_v13  ;;  %1120 = vmatpush.xpose.msra.mxu2 %v285_v13 }
  0x60   : > { %1121 = vmatpush.xpose.msra.mxu3 %v285_v13 }
  0x63   : > { %330 = vmatpush.xpose.msra.mxu0 %v284_v14  ;;  %1122 = vmatpush.xpose.msra.mxu2 %v284_v14 }
  0x64   : > { %1123 = vmatpush.xpose.msra.mxu3 %v284_v14 }
  0x67   : > { %331 = vmatpush.xpose.msra.mxu0 %v283_v16  ;;  %1124 = vmatpush.xpose.msra.mxu2 %v283_v16 }
  0x68   : > { %1125 = vmatpush.xpose.msra.mxu3 %v283_v16 }
  0x6a   : > { %332 = vmatmul.f32.vlgmr.msra.gmra.mxu0 %v1649_v18  ;;  %347 = vmatmul.f32.vlgmr.msra.gmra.mxu2 %v1652_v19 }
  0x6b   : > { %819 = vmatpush.msrb.mxu0 %v1644_v15  ;;  %368 = vmatmul.f32.vlgmr.msra.gmra.mxu3 %v279_v20 }
  0x6c   : > { %1127 = vmatpush.msrb.mxu3 %v1644_v15 }
  0x6d   : > { %820 = vmatpush.msrb.mxu0 %v281_v17 }
  0x6e   : > { %1129 = vmatpush.msrb.mxu3 %v281_v17 }
  0x6f   : > { %821 = vmatpush.msrb.mxu0 %v280_v21 }
  0x70   : > { %1131 = vmatpush.msrb.mxu3 %v280_v21 }
  0x71   : > { %822 = vmatpush.msrb.mxu0 %v279_v20 }
  0x72   : > { %1133 = vmatpush.msrb.mxu3 %v279_v20  ;;  %335 = vmatmul.f32.gmra.mxu0 %v1661_v22 }
  0x73   : > { %350 = vmatmul.f32.gmra.mxu2 %v273_v23  ;;  %371 = vmatmul.f32.gmra.mxu3 %v280_v21  ;;  %s1159_s24 = spop %1158 }
  0x74   : > { %823 = vmatpush.msrb.mxu0 %v1666_v24  ;;  %1135 = vmatpush.msrb.mxu3 %v1666_v24  ;;  %v381_v45 = vstv %s1159_s24 }
  0x76   : > { %824 = vmatpush.msrb.mxu0 %v1670_v25  ;;  %1137 = vmatpush.msrb.mxu3 %v1670_v25 }
  0x78   : > { %825 = vmatpush.msrb.mxu0 %v276_v26  ;;  %1139 = vmatpush.msrb.mxu3 %v276_v26 }
  0x7a   : > { %826 = vmatpush.msrb.mxu0 %v275_v29  ;;  %1141 = vmatpush.msrb.mxu3 %v275_v29 }
  0x7b   : > { %338 = vmatmul.f32.gmra.mxu0 %v269_v27  ;;  %353 = vmatmul.f32.gmra.mxu2 %v274_v28 }
  0x7c   : > { %374 = vmatmul.f32.gmra.mxu3 %v281_v17  ;;  %827 = vmatpush.msrb.mxu0 %v274_v28 }
  0x7d   : > { %1143 = vmatpush.msrb.mxu3 %v274_v28 }
  0x7e   : > { %828 = vmatpush.msrb.mxu0 %v273_v23 }
  0x7f   : > { %1145 = vmatpush.msrb.mxu3 %v273_v23 }
  0x80   : > { %829 = vmatpush.msrb.mxu0 %v1652_v19 }
  0x81   : > { %1147 = vmatpush.msrb.mxu3 %v1652_v19 }
  0x82   : > { %830 = vmatpush.msrb.mxu0 %v271_v32 }
  0x83   : > { %341 = vmatmul.f32.gmra.mxu0 %v270_v31  ;;  %356 = vmatmul.f32.gmra.mxu2 %v275_v29 }
  0x84   : > { %377 = vmatmul.f32.gmra.mxu3 %v1644_v15  ;;  %831 = vmatpush.msrb.mxu0 %v270_v31 }
  0x85   : > { %1149 = vmatpush.msrb.mxu3 %v271_v32 }
  0x86   : > { %832 = vmatpush.msrb.mxu0 %v269_v27 }
  0x87   : > { %1151 = vmatpush.msrb.mxu3 %v270_v31 }
  0x88   : > { %833 = vmatpush.msrb.mxu0 %v1661_v22 }
  0x89   : > { %1153 = vmatpush.msrb.mxu3 %v269_v27 }
  0x8a   : > { %834 = vmatpush.msrb.mxu0 %v1649_v18 }
  0x8b   : > { %344 = vmatmul.f32.gmra.mxu0 %v271_v32  ;;  %359 = vmatmul.f32.gmra.mxu2 %v276_v26 }
  0x8c   : > { %1155 = vmatpush.msrb.mxu3 %v1661_v22 }
  0x8e   : > { %1157 = vmatpush.msrb.mxu3 %v1649_v18 }
  0x93   : > { %362 = vmatmul.f32.gmra.mxu2 %v1670_v25 }
  0x9b   : > { %365 = vmatmul.f32.gmra.mxu2 %v1666_v24 }
  0xe7   : > { %v333_v46 = vpop.f32.mrf.mxu0 }
  0xe8   : > { %v382_v47 = vmul.f32 %v381_v45, %v333_v46 }
  0xea   : > { %v1700_v48 = vsel %vm400_vm4, %v382_v47, -1e+30 }
  0xeb   : > { %419 = vmax.xlane.f32.xlu0 %v1700_v48 }
  0xed   : > { %v348_v49 = vpop.f32.mrf.mxu2 }
  0xee   : > { %v387_v50 = vmul.f32 %v381_v45, %v348_v49  ;;  %v369_v61 = vpop.f32.mrf.mxu3 }
  0xef   : > { %v336_v51 = vpop.f32.mrf.mxu0  ;;  %v394_v15 = vmul.f32 %v381_v45, %v369_v61 }
  0xf0   : > { %v383_v52 = vmul.f32 %v381_v45, %v336_v51  ;;  %v1705_v53 = vsel %vm400_vm4, %v387_v50, -1e+30 }
  0xf1   : > { %429 = vmax.xlane.f32.xlu2 %v1705_v53  ;;  %v1741_v19 = vsel %vm400_vm4, %v394_v15, -1e+30 }
  0xf2   : > { %v404_v54 = vsel %vm400_vm4, %v383_v52, -1e+30 }
  0xf3   : > { %421 = vmax.xlane.f32.xlu0 %v404_v54 }
  0xf6   : > { %v351_v55 = vpop.f32.mrf.mxu2  ;;  %v372_v2 = vpop.f32.mrf.mxu3 }
  0xf7   : > { %v388_v56 = vmul.f32 %v381_v45, %v351_v55  ;;  %v395_v23 = vmul.f32 %v381_v45, %v372_v2 }
  0xf8   : > { %v339_v57 = vpop.f32.mrf.mxu0 }
  0xf9   : > { %v384_v58 = vmul.f32 %v381_v45, %v339_v57  ;;  %v1712_v59 = vsel %vm400_vm4, %v388_v56, -1e+30  ;;  %v1760_v28 = vsel %vm400_vm4, %v395_v23, -1e+30 }
  0xfb   : > { %v405_v60 = vsel %vm400_vm4, %v384_v58, -1e+30  ;;  %431 = vmax.xlane.f32.xlu0 %v1712_v59 }
  0xfc   : > { %423 = vmax.xlane.f32.xlu1 %v405_v60 }
  0xfe   : > { %v354_v62 = vpop.f32.mrf.mxu2 }
  0xff   : > { %v389_v4 = vmul.f32 %v381_v45, %v354_v62  ;;  %v375_v12 = vpop.f32.mrf.mxu3 }
 0x100   : > { %v342_v63 = vpop.f32.mrf.mxu0  ;;  %v396_v16 = vmul.f32 %v381_v45, %v375_v12 }
 0x101   : > { %v385_v0 = vmul.f32 %v381_v45, %v342_v63  ;;  %v1726_v8 = vsel %vm400_vm4, %v389_v4, -1e+30 }
 0x102   : > { %v1751_v22 = vsel %vm400_vm4, %v396_v16, -1e+30 }
 0x103   : > { %v406_v1 = vsel %vm400_vm4, %v385_v0, -1e+30 }
 0x104   : > { %425 = vmax.xlane.f32.xlu1 %v406_v1 }
 0x106   : > { %v357_v3 = vpop.f32.mrf.mxu2 }
 0x107   : > { %v390_v5 = vmul.f32 %v381_v45, %v357_v3  ;;  %v378_v21 = vpop.f32.mrf.mxu3 }
 0x108   : > { %v345_v7 = vpop.f32.mrf.mxu0  ;;  %v397_v24 = vmul.f32 %v381_v45, %v378_v21 }
 0x109   : > { %v1721_v6 = vsel %vm400_vm4, %v390_v5, -1e+30  ;;  %v386_v9 = vmul.f32 %v381_v45, %v345_v7 }
 0x10a   : > { %435 = vmax.xlane.f32.xlu2 %v1721_v6  ;;  %v1756_v27 = vsel %vm400_vm4, %v397_v24, -1e+30 }
 0x10b   : > { %v1735_v14 = vsel %vm400_vm4, %v386_v9, -1e+30 }
 0x10c   : > { %433 = vmax.xlane.f32.xlu1 %v1726_v8 }
 0x10e   : > { %v360_v10 = vpop.f32.mrf.mxu2 }
 0x10f   : > { %v391_v11 = vmul.f32 %v381_v45, %v360_v10 }
 0x111   : > { %v1731_v13 = vsel %vm400_vm4, %v391_v11, -1e+30 }
 0x112   : > { %437 = vmax.xlane.f32.xlu0 %v1731_v13  ;;  %427 = vmax.xlane.f32.xlu2 %v1735_v14 }
 0x116   : > { %v363_v17 = vpop.f32.mrf.mxu2 }
 0x117   : > { %v392_v18 = vmul.f32 %v381_v45, %v363_v17 }
 0x119   : > { %v1745_v20 = vsel %vm400_vm4, %v392_v18, -1e+30 }
 0x11a   : > { %443 = vmax.xlane.f32.xlu0 %v1741_v19  ;;  %439 = vmax.xlane.f32.xlu1 %v1745_v20 }
 0x11b   : > { %447 = vmax.xlane.f32.xlu2 %v1751_v22 }
 0x11e   : > { %v366_v25 = vpop.f32.mrf.mxu2 }
 0x11f   : > { %v393_v26 = vmul.f32 %v381_v45, %v366_v25 }
 0x121   : > { %v1764_v29 = vsel %vm400_vm4, %v393_v26, -1e+30 }
 0x122   : > { %449 = vmax.xlane.f32.xlu0 %v1756_v27  ;;  %445 = vmax.xlane.f32.xlu1 %v1760_v28 }
 0x123   : > { %441 = vmax.xlane.f32.xlu2 %v1764_v29 }
 0x15e   : > { %v420_v30 = vpop.xlane.xlu0 %419 }
 0x15f   : > { %v451_v31 = vsub.f32 %v1700_v48, %v420_v30 }
 0x161   : > { %v467_v32 = vmul.f32 1.442695, %v451_v31 }
 0x163   : > { %1244 = vpow2.f32 %v467_v32 }
 0x164   : > { %v430_v40 = vpop.xlane.xlu2 %429 }
 0x165   : > { %v456_v42 = vsub.f32 %v1705_v53, %v430_v40 }
 0x166   : > { %v422_v33 = vpop.xlane.xlu0 %421 }
 0x167   : > { %v452_v34 = vsub.f32 %v404_v54, %v422_v33  ;;  %v477_v46 = vmul.f32 1.442695, %v456_v42 }
 0x169   : > { %v1770_v35 = vpop.eup %1244  ;;  %v469_v36 = vmul.f32 1.442695, %v452_v34 }
 0x16a   : > { %499 = vadd.xlane.f32.xlu1 %v1770_v35 }
 0x16b   : > { %1246 = vpow2.f32 %v469_v36 }
 0x16e   : > { %v432_v44 = vpop.xlane.xlu0 %431 }
 0x16f   : > { %v424_v37 = vpop.xlane.xlu1 %423  ;;  %v457_v49 = vsub.f32 %v1712_v59, %v432_v44 }
 0x170   : > { %v453_v38 = vsub.f32 %v405_v60, %v424_v37 }
 0x171   : > { %v1773_v39 = vpop.eup %1246  ;;  %v479_v52 = vmul.f32 1.442695, %v457_v49 }
 0x172   : > { %v471_v41 = vmul.f32 1.442695, %v453_v38  ;;  %501 = vadd.xlane.f32.xlu2 %v1773_v39 }
 0x174   : > { %1248 = vpow2.f32 %v471_v41 }
 0x177   : > { %v426_v43 = vpop.xlane.xlu1 %425 }
 0x178   : > { %v454_v45 = vsub.f32 %v406_v1, %v426_v43 }
 0x17a   : > { %v473_v47 = vmul.f32 1.442695, %v454_v45  ;;  %v1777_v48 = vpop.eup %1248 }
 0x17b   : > { %503 = vadd.xlane.f32.xlu0 %v1777_v48 }
 0x17c   : > { %1250 = vpow2.f32 %v473_v47 }
 0x17d   : > { %1252 = vpow2.f32 %v477_v46  ;;  %v436_v50 = vpop.xlane.xlu2 %435 }
 0x17e   : > { %v459_v51 = vsub.f32 %v1721_v6, %v436_v50  ;;  %1254 = vpow2.f32 %v479_v52 }
 0x17f   : > { %v434_v54 = vpop.xlane.xlu1 %433 }
 0x180   : > { %v458_v53 = vsub.f32 %v1726_v8, %v434_v54  ;;  %v483_v55 = vmul.f32 1.442695, %v459_v51 }
 0x182   : > { %v1783_v56 = vpop.eup %1250  ;;  %v481_v57 = vmul.f32 1.442695, %v458_v53 }
 0x183   : > { %v1785_v58 = vpop.eup %1252  ;;  %505 = vadd.xlane.f32.xlu1 %v1783_v56 }
 0x184   : > { %1256 = vpow2.f32 %v481_v57  ;;  %509 = vadd.xlane.f32.xlu0 %v1785_v58  ;;  %v1791_v1 = vpop.eup %1254 }
 0x185   : > { %1258 = vpow2.f32 %v483_v55  ;;  %v438_v59 = vpop.xlane.xlu0 %437  ;;  %v428_v60 = vpop.xlane.xlu2 %427 }
 0x186   : > { %v460_v61 = vsub.f32 %v1731_v13, %v438_v59  ;;  %v455_v62 = vsub.f32 %v1735_v14, %v428_v60 }
 0x188   : > { %v485_v63 = vmul.f32 1.442695, %v460_v61  ;;  %v475_v0 = vmul.f32 1.442695, %v455_v62 }
 0x18a   : > { %v1793_v2 = vpop.eup %1256  ;;  %1260 = vpow2.f32 %v485_v63 }
 0x18b   : > { %v1795_v3 = vpop.eup %1258  ;;  %511 = vadd.xlane.f32.xlu1 %v1791_v1  ;;  %513 = vadd.xlane.f32.xlu2 %v1793_v2  ;;  %1262 = vpow2.f32 %v475_v0 }
 0x18c   : > { %515 = vadd.xlane.f32.xlu0 %v1795_v3 }
 0x18d   : > { %v444_v4 = vpop.xlane.xlu0 %443  ;;  %v440_v5 = vpop.xlane.xlu1 %439 }
 0x18e   : > { %v463_v6 = vsub.f32 %v1741_v19, %v444_v4  ;;  %v461_v7 = vsub.f32 %v1745_v20, %v440_v5  ;;  %v448_v8 = vpop.xlane.xlu2 %447 }
 0x18f   : > { %v465_v25 = vsub.f32 %v1751_v22, %v448_v8 }
 0x190   : > { %v491_v9 = vmul.f32 1.442695, %v463_v6  ;;  %v487_v10 = vmul.f32 1.442695, %v461_v7  ;;  %v1802_v11 = vpop.eup %1260 }
 0x191   : > { %v1804_v12 = vpop.eup %1262  ;;  %v495_v26 = vmul.f32 1.442695, %v465_v25 }
 0x192   : > { %1264 = vpow2.f32 %v491_v9 }
 0x193   : > { %517 = vadd.xlane.f32.xlu1 %v1802_v11  ;;  %507 = vadd.xlane.f32.xlu2 %v1804_v12  ;;  %1266 = vpow2.f32 %v487_v10 }
 0x195   : > { %v450_v13 = vpop.xlane.xlu0 %449  ;;  %v446_v14 = vpop.xlane.xlu1 %445 }
 0x196   : > { %v466_v15 = vsub.f32 %v1756_v27, %v450_v13  ;;  %v464_v16 = vsub.f32 %v1760_v28, %v446_v14  ;;  %v442_v17 = vpop.xlane.xlu2 %441 }
 0x197   : > { %v462_v18 = vsub.f32 %v1764_v29, %v442_v17 }
 0x198   : > { %v497_v19 = vmul.f32 1.442695, %v466_v15  ;;  %v1811_v20 = vpop.eup %1264  ;;  %v493_v21 = vmul.f32 1.442695, %v464_v16 }
 0x199   : > { %v489_v23 = vmul.f32 1.442695, %v462_v18  ;;  %v1813_v24 = vpop.eup %1266 }
 0x19a   : > { %1268 = vpow2.f32 %v497_v19 }
 0x19b   : > { %523 = vadd.xlane.f32.xlu1 %v1811_v20  ;;  %519 = vadd.xlane.f32.xlu2 %v1813_v24  ;;  %1270 = vpow2.f32 %v489_v23 }
 0x19c   : > { %1272 = vpow2.f32 %v493_v21 }
 0x19d   : > { %1274 = vpow2.f32 %v495_v26 }
 0x1a0   : > { %v1818_v27 = vpop.eup %1268 }
 0x1a1   : > { %v1820_v28 = vpop.eup %1270 }
 0x1a2   : > { %v1822_v29 = vpop.eup %1272  ;;  %521 = vadd.xlane.f32.xlu0 %v1820_v28 }
 0x1a3   : > { %529 = vadd.xlane.f32.xlu1 %v1818_v27  ;;  %525 = vadd.xlane.f32.xlu2 %v1822_v29  ;;  %v1827_v30 = vpop.eup %1274 }
 0x1aa   : > { %527 = vadd.xlane.f32.xlu0 %v1827_v30 }
 0x1dd   : > { %v500_v22 = vpop.xlane.xlu1 %499 }
 0x1de   : > { %1276 = vrcp.f32 %v500_v22  ;;  %v542_v36 = vand.u32 2147483648, %v500_v22  ;;  %v540_v38 = vand.u32 2147483647, %v500_v22  ;;  %vm536_vm6 = vweird.f32 %v500_v22 }
 0x1e0   : > { %v543_v42 = vor.u32 1.1754944e-38, %v542_v36  ;;  %vm541_vm8 = vcmp.eq.f32.partialorder %v540_v38, 8.507059e+37 }
 0x1e4   : > { %v1277_v31 = vpop.eup %1276 }
 0x1e5   : > { %v532_v32 = vmul.f32 %v1277_v31, %v500_v22  ;;  %v502_v33 = vpop.xlane.xlu2 %501  ;;  %vm537_vm5 = vweird.f32 %v1277_v31 }
 0x1e6   : > { %1278 = vrcp.f32 %v502_v33  ;;  %vm538_vm7 = vmor %vm536_vm6, %vm537_vm5  ;;  %v556_v51 = vand.u32 2147483648, %v502_v33  ;;  %v554_v52 = vand.u32 2147483647, %v502_v33  ;;  %vm550_vm10 = vweird.f32 %v502_v33 }
 0x1e7   : > { %v533_v34 = vsub.f32 1.0, %v532_v32 }
 0x1e8   : > { %v557_v55 = vor.u32 1.1754944e-38, %v556_v51  ;;  %vm555_vm12 = vcmp.eq.f32.partialorder %v554_v52, 8.507059e+37 }
 0x1e9   : > { %v534_v37 = vmul.f32 %v1277_v31, %v533_v34 }
 0x1eb   : > { %v535_v40 = vadd.f32 %v1277_v31, %v534_v37 }
 0x1ec   : > { %v1279_v41 = vpop.eup %1278 }
 0x1ed   : > { %v546_v43 = vmul.f32 %v1279_v41, %v502_v33  ;;  %v539_v44 = vsel %vm538_vm7, %v1277_v31, %v535_v40  ;;  %vm551_vm9 = vweird.f32 %v1279_v41 }
 0x1ee   : > { %v504_v45 = vpop.xlane.xlu0 %503  ;;  %v544_v46 = vsel %vm541_vm8, %v543_v42, %v539_v44  ;;  %vm552_vm11 = vmor %vm550_vm10, %vm551_vm9 }
 0x1ef   : > { %v547_v47 = vsub.f32 1.0, %v546_v43  ;;  %1280 = vrcp.f32 %v504_v45  ;;  %v755_v49 = vmul.f32 %v1770_v35, %v544_v46  ;;  %v570_v4 = vand.u32 2147483648, %v504_v45 }
 0x1f0   : > { %v568_v5 = vand.u32 2147483647, %v504_v45  ;;  %vm564_vm13 = vweird.f32 %v504_v45 }
 0x1f1   : > { %v548_v50 = vmul.f32 %v1279_v41, %v547_v47  ;;  %771 = vst [vmem:[%s1832_s26] sm:$0xff] %v755_v49  ;;  %787 = vxpose.xlu2.b32.start [1/16] %v755_v49, 128  ;;  %v571_v14 = vor.u32 1.1754944e-38, %v570_v4 }
 0x1f2   : > { %vm1854_vm15 = vcmp.eq.f32.partialorder %v568_v5, 8.507059e+37 }
 0x1f3   : > { %v549_v54 = vadd.f32 %v1279_v41, %v548_v50 }
 0x1f5   : > { %v1281_v53 = vpop.eup %1280  ;;  %v553_v59 = vsel %vm552_vm11, %v1279_v41, %v549_v54 }
 0x1f6   : > { %v506_v57 = vpop.xlane.xlu1 %505  ;;  %v560_v60 = vmul.f32 %v1281_v53, %v504_v45  ;;  %v558_v35 = vsel %vm555_vm12, %v557_v55, %v553_v59  ;;  %vm565_vm14 = vweird.f32 %v1281_v53 }
 0x1f7   : > { %v1835_v61 = vpop.xlane.xlu0 %509  ;;  %1282 = vrcp.f32 %v506_v57  ;;  %v756_v63 = vmul.f32 %v1773_v39, %v558_v35  ;;  %v584_v19 = vand.u32 2147483648, %v506_v57  ;;  %vm566_vm0 = vmor %vm564_vm13, %vm565_vm14  ;;  %v582_v23 = vand.u32 2147483647, %v506_v57 }
 0x1f8   : > { %1284 = vrcp.f32 %v1835_v61  ;;  %v561_v62 = vsub.f32 1.0, %v560_v60  ;;  %v612_v17 = vand.u32 2147483648, %v1835_v61  ;;  %v610_v25 = vand.u32 2147483647, %v1835_v61 }
 0x1f9   : > { %788 = vxpose.xlu2.b32.cont [2/16] %v756_v63, 128  ;;  %772 = vst [vmem:[%s1832_s26 + $0x8] sm:$0xff] %v756_v63  ;;  %vm606_vm2 = vweird.f32 %v1835_v61  ;;  %vm578_vm3 = vweird.f32 %v506_v57  ;;  %v585_v36 = vor.u32 1.1754944e-38, %v584_v19  ;;  %vm1880_vm6 = vcmp.eq.f32.partialorder %v582_v23, 8.507059e+37 }
 0x1fa   : > { %v562_v0 = vmul.f32 %v1281_v53, %v561_v62  ;;  %v613_v34 = vor.u32 1.1754944e-38, %v612_v17  ;;  %vm1884_vm7 = vcmp.eq.f32.partialorder %v610_v25, 8.507059e+37 }
 0x1fc   : > { %v563_v13 = vadd.f32 %v1281_v53, %v562_v0 }
 0x1fd   : > { %v1840_v6 = vpop.eup %1282 }
 0x1fe   : > { %v1842_v7 = vpop.eup %1284  ;;  %v574_v8 = vmul.f32 %v1840_v6, %v506_v57  ;;  %v1845_v9 = vpop.xlane.xlu1 %511  ;;  %v567_v31 = vsel %vm566_vm0, %v1281_v53, %v563_v13  ;;  %vm579_vm1 = vweird.f32 %v1840_v6 }
 0x1ff   : > { %v1847_v10 = vpop.xlane.xlu2 %513  ;;  %v602_v39 = vmul.f32 %v1842_v7, %v1835_v61  ;;  %v1851_v15 = vpop.xlane.xlu0 %515  ;;  %1286 = vrcp.f32 %v1845_v9  ;;  %v626_v22 = vand.u32 2147483648, %v1845_v9  ;;  %v572_v33 = vsel %vm1854_vm15, %v571_v14, %v567_v31  ;;  %vm1876_vm5 = vmor %vm578_vm3, %vm579_vm1 }
 0x200   : > { %v575_v18 = vsub.f32 1.0, %v574_v8  ;;  %1288 = vrcp.f32 %v1851_v15  ;;  %v757_v37 = vmul.f32 %v1777_v48, %v572_v33  ;;  %v654_v41 = vand.u32 2147483648, %v1851_v15 }
 0x201   : > { %v603_v21 = vsub.f32 1.0, %v602_v39  ;;  %1290 = vrcp.f32 %v1847_v10  ;;  %vm620_vm4 = vweird.f32 %v1845_v9  ;;  %v1892_v46 = vor.u32 1.1754944e-38, %v626_v22 }
 0x202   : > { %v576_v26 = vmul.f32 %v1840_v6, %v575_v18  ;;  %v640_v47 = vand.u32 2147483648, %v1847_v10  ;;  %773 = vst [vmem:[%s1832_s26 + $0x10] sm:$0xff] %v757_v37  ;;  %789 = vxpose.xlu2.b32.cont [3/16] %v757_v37, 128  ;;  %vm607_vm8 = vweird.f32 %v1842_v7  ;;  %v624_v59 = vand.u32 2147483647, %v1845_v9 }
 0x203   : > { %v604_v32 = vmul.f32 %v1842_v7, %v603_v21  ;;  %vm648_vm9 = vweird.f32 %v1851_v15  ;;  %v655_v35 = vor.u32 1.1754944e-38, %v654_v41  ;;  %vm634_vm10 = vweird.f32 %v1847_v10  ;;  %vm608_vm11 = vmor %vm606_vm2, %vm607_vm8 }
 0x204   : > { %v577_v38 = vadd.f32 %v1840_v6, %v576_v26  ;;  %v638_v13 = vand.u32 2147483647, %v1847_v10  ;;  %vm1931_vm13 = vcmp.eq.f32.partialorder %v624_v59, 8.507059e+37  ;;  %v652_v21 = vand.u32 2147483647, %v1851_v15 }
 0x205   : > { %v1872_v40 = vpop.eup %1286  ;;  %v605_v53 = vadd.f32 %v1842_v7, %v604_v32 }
 0x206   : > { %v1888_v48 = vpop.eup %1288  ;;  %v616_v45 = vmul.f32 %v1872_v40, %v1845_v9  ;;  %v1896_v49 = vpop.xlane.xlu1 %517  ;;  %v581_v51 = vsel %vm1876_vm5, %v1840_v6, %v577_v38  ;;  %vm621_vm12 = vweird.f32 %v1872_v40  ;;  %v641_v6 = vor.u32 1.1754944e-38, %v640_v47 }
 0x207   : > { %v1898_v50 = vpop.xlane.xlu2 %507  ;;  %v1903_v52 = vpop.eup %1290  ;;  %v644_v54 = vmul.f32 %v1888_v48, %v1851_v15  ;;  %1292 = vrcp.f32 %v1896_v49  ;;  %v586_v62 = vsel %vm1880_vm6, %v585_v36, %v581_v51  ;;  %v609_v8 = vsel %vm608_vm11, %v1842_v7, %v605_v53  ;;  %vm1944_vm14 = vmor %vm620_vm4, %vm621_vm12 }
 0x208   : > { %v617_v55 = vsub.f32 1.0, %v616_v45  ;;  %v630_v57 = vmul.f32 %v1903_v52, %v1847_v10  ;;  %1294 = vrcp.f32 %v1898_v50  ;;  %v758_v4 = vmul.f32 %v1783_v56, %v586_v62 }
 0x209   : > { %v645_v60 = vsub.f32 1.0, %v644_v54  ;;  %v614_v39 = vsel %vm1884_vm7, %v613_v34, %v609_v8  ;;  %v668_v17 = vand.u32 2147483648, %v1896_v49  ;;  %v598_v7 = vand.u32 2147483648, %v1898_v50 }
 0x20a   : > { %v618_v63 = vmul.f32 %v1872_v40, %v617_v55  ;;  %v631_v0 = vsub.f32 1.0, %v630_v57  ;;  %774 = vst [vmem:[%s1832_s26 + $0x18] sm:$0xff] %v758_v4  ;;  %v1940_v18 = vmul.f32 %v1785_v58, %v614_v39  ;;  %790 = vxpose.xlu2.b32.cont [4/16] %v758_v4, 128  ;;  %vm635_vm15 = vweird.f32 %v1903_v52 }
 0x20b   : > { %v646_v5 = vmul.f32 %v1888_v48, %v645_v60  ;;  %vm649_vm0 = vweird.f32 %v1888_v48  ;;  %vm662_vm1 = vweird.f32 %v1896_v49  ;;  %vm639_vm2 = vcmp.eq.f32.partialorder %v638_v13, 8.507059e+37  ;;  %vm636_vm4 = vmor %vm634_vm10, %vm635_vm15 }
 0x20c   : > { %v632_v14 = vmul.f32 %v1903_v52, %v631_v0  ;;  %v619_v56 = vadd.f32 %v1872_v40, %v618_v63  ;;  %776 = vst [vmem:[%s1832_s26 + $0x28] sm:$0xff] %v1940_v18  ;;  %v669_v34 = vor.u32 1.1754944e-38, %v668_v17  ;;  %vm592_vm3 = vweird.f32 %v1898_v50  ;;  %vm650_vm5 = vmor %vm648_vm9, %vm649_vm0 }
 0x20d   : > { %v1935_v16 = vpop.eup %1292  ;;  %v647_v32 = vadd.f32 %v1888_v48, %v646_v5  ;;  %v596_v37 = vand.u32 2147483647, %v1898_v50  ;;  %v599_v41 = vor.u32 1.1754944e-38, %v598_v7  ;;  %vm653_vm6 = vcmp.eq.f32.partialorder %v652_v21, 8.507059e+37 }
 0x20e   : > { %v1949_v23 = vpop.eup %1294  ;;  %v658_v25 = vmul.f32 %v1935_v16, %v1896_v49  ;;  %v1953_v26 = vpop.xlane.xlu1 %523  ;;  %v623_v58 = vsel %vm1944_vm14, %v1872_v40, %v619_v56  ;;  %v633_v9 = vadd.f32 %v1903_v52, %v632_v14  ;;  %vm663_vm7 = vweird.f32 %v1935_v16 }
 0x20f   : > { %v1955_v22 = vpop.xlane.xlu2 %519  ;;  %v588_v31 = vmul.f32 %v1949_v23, %v1898_v50  ;;  %1296 = vrcp.f32 %v1953_v26  ;;  %v628_v38 = vsel %vm1931_vm13, %v1892_v46, %v623_v58  ;;  %v651_v46 = vsel %vm650_vm5, %v1888_v48, %v647_v32  ;;  %vm2034_vm11 = vmor %vm662_vm1, %vm663_vm7 }
 0x210   : > { %v659_v33 = vsub.f32 1.0, %v658_v25  ;;  %1298 = vrcp.f32 %v1955_v22  ;;  %v1982_v42 = vmul.f32 %v1791_v1, %v628_v38  ;;  %v637_v43 = vsel %vm636_vm4, %v1903_v52, %v633_v9 }
 0x211   : > { %v589_v36 = vsub.f32 1.0, %v588_v31  ;;  %v642_v45 = vsel %vm639_vm2, %v641_v6, %v637_v43  ;;  %v656_v1 = vsel %vm653_vm6, %v655_v35, %v651_v46  ;;  %v710_v15 = vand.u32 2147483648, %v1953_v26 }
 0x212   : > { %v660_v40 = vmul.f32 %v1935_v16, %v659_v33  ;;  %777 = vst [vmem:[%s1832_s26 + $0x30] sm:$0xff] %v1982_v42  ;;  %v1994_v10 = vmul.f32 %v1793_v2, %v642_v45  ;;  %v682_v52 = vand.u32 2147483648, %v1955_v22  ;;  %vm2002_vm8 = vcmp.eq.f32.partialorder %v596_v37, 8.507059e+37 }
 0x213   : > { %v590_v44 = vmul.f32 %v1949_v23, %v589_v36  ;;  %v2007_v54 = vmul.f32 %v1795_v3, %v656_v1  ;;  %vm704_vm9 = vweird.f32 %v1953_v26  ;;  %vm593_vm10 = vweird.f32 %v1949_v23 }
 0x214   : > { %v661_v47 = vadd.f32 %v1935_v16, %v660_v40  ;;  %778 = vst [vmem:[%s1832_s26 + $0x38] sm:$0xff] %v1994_v10  ;;  %v666_v59 = vand.u32 2147483647, %v1896_v49  ;;  %v680_v63 = vand.u32 2147483647, %v1955_v22  ;;  %vm676_vm12 = vweird.f32 %v1955_v22  ;;  %vm594_vm13 = vmor %vm592_vm3, %vm593_vm10 }
 0x215   : > { %v1998_v51 = vpop.eup %1296  ;;  %v2014_v55 = vpop.xlane.xlu0 %521  ;;  %v591_v35 = vadd.f32 %v1949_v23, %v590_v44  ;;  %779 = vst [vmem:[%s1832_s26 + $0x40] sm:$0xff] %v2007_v54  ;;  %v711_v5 = vor.u32 1.1754944e-38, %v710_v15  ;;  %v683_v8 = vor.u32 1.1754944e-38, %v682_v52  ;;  %v708_v14 = vand.u32 2147483647, %v1953_v26 }
 0x216   : > { %v2009_v2 = vpop.eup %1298  ;;  %v700_v53 = vmul.f32 %v1998_v51, %v1953_v26  ;;  %v2016_v57 = vpop.xlane.xlu1 %529  ;;  %1300 = vrcp.f32 %v2014_v55  ;;  %v665_v4 = vsel %vm2034_vm11, %v1935_v16, %v661_v47  ;;  %v696_v13 = vand.u32 2147483648, %v2014_v55 }
 0x217   : > { %v672_v3 = vmul.f32 %v2009_v2, %v1955_v22  ;;  %v2025_v60 = vpop.xlane.xlu2 %525  ;;  %1302 = vrcp.f32 %v2016_v57  ;;  %vm667_vm14 = vcmp.eq.f32.partialorder %v666_v59, 8.507059e+37  ;;  %v595_v56 = vsel %vm594_vm13, %v1949_v23, %v591_v35 }
 0x218   : > { %v701_v0 = vsub.f32 1.0, %v700_v53  ;;  %1304 = vrcp.f32 %v2025_v60  ;;  %v670_v61 = vsel %vm667_vm14, %v669_v34, %v665_v4  ;;  %vm2054_vm15 = vcmp.eq.f32.partialorder %v680_v63, 8.507059e+37 }
 0x219   : > { %v673_v6 = vsub.f32 1.0, %v672_v3  ;;  %vm690_vm0 = vweird.f32 %v2014_v55  ;;  %v600_v17 = vsel %vm2002_vm8, %v599_v41, %v595_v56  ;;  %v2062_v50 = vmul.f32 %v1802_v11, %v670_v61 }
 0x21a   : > { %v702_v49 = vmul.f32 %v1998_v51, %v701_v0  ;;  %vm705_vm1 = vweird.f32 %v1998_v51  ;;  %v759_v19 = vmul.f32 %v1804_v12, %v600_v17  ;;  %vm677_vm2 = vweird.f32 %v2009_v2 }
 0x21b   : > { %v674_v39 = vmul.f32 %v2009_v2, %v673_v6  ;;  %v697_v9 = vor.u32 1.1754944e-38, %v696_v13  ;;  %vm746_vm3 = vweird.f32 %v2016_v57  ;;  %v750_v11 = vand.u32 2147483647, %v2016_v57  ;;  %780 = vst [vmem:[%s1832_s26 + $0x48] sm:$0xff] %v2062_v50  ;;  %vm2085_vm4 = vmor %vm704_vm9, %vm705_vm1 }
 0x21c   : > { %v1301_v7 = vpop.eup %1300  ;;  %v703_v23 = vadd.f32 %v1998_v51, %v702_v49  ;;  %v752_v33 = vand.u32 2147483648, %v2016_v57  ;;  %v724_v34 = vand.u32 2147483648, %v2025_v60  ;;  %791 = vxpose.xlu2.b32.cont [5/16] %v759_v19, 128  ;;  %775 = vst [vmem:[%s1832_s26 + $0x20] sm:$0xff] %v759_v19  ;;  %vm678_vm5 = vmor %vm676_vm12, %vm677_vm2  ;;  %v694_v40 = vand.u32 2147483647, %v2014_v55 }
 0x21d   : > { %v675_v21 = vadd.f32 %v2009_v2, %v674_v39  ;;  %v1303_v25 = vpop.eup %1302  ;;  %v686_v58 = vmul.f32 %v1301_v7, %v2014_v55  ;;  %v2072_v31 = vpop.xlane.xlu0 %527  ;;  %vm691_vm6 = vweird.f32 %v1301_v7  ;;  %vm709_vm7 = vcmp.eq.f32.partialorder %v708_v14, 8.507059e+37 }
 0x21e   : > { %v1305_v12 = vpop.eup %1304  ;;  %v742_v32 = vmul.f32 %v1303_v25, %v2016_v57  ;;  %1306 = vrcp.f32 %v2072_v31  ;;  %v707_v26 = vsel %vm2085_vm4, %v1998_v51, %v703_v23  ;;  %vm747_vm8 = vweird.f32 %v1303_v25  ;;  %vm692_vm12 = vmor %vm690_vm0, %vm691_vm6 }
 0x21f   : > { %v687_v37 = vsub.f32 1.0, %v686_v58  ;;  %v714_v38 = vmul.f32 %v1305_v12, %v2025_v60  ;;  %v679_v43 = vsel %vm678_vm5, %v2009_v2, %v675_v21  ;;  %v722_v46 = vand.u32 2147483647, %v2025_v60  ;;  %vm2115_vm13 = vmor %vm746_vm3, %vm747_vm8 }
 0x220   : > { %v743_v41 = vsub.f32 1.0, %v742_v32  ;;  %v684_v22 = vsel %vm2054_vm15, %v683_v8, %v679_v43  ;;  %v712_v47 = vsel %vm709_vm7, %v711_v5, %v707_v26  ;;  %vm719_vm9 = vweird.f32 %v1305_v12 }
 0x221   : > { %v688_v44 = vmul.f32 %v1301_v7, %v687_v37  ;;  %v715_v45 = vsub.f32 1.0, %v714_v38  ;;  %v765_v52 = vmul.f32 %v1813_v24, %v684_v22  ;;  %v767_v2 = vmul.f32 %v1811_v20, %v712_v47 }
 0x222   : > { %v744_v1 = vmul.f32 %v1303_v25, %v743_v41  ;;  %vm2104_vm10 = vcmp.eq.f32.partialorder %v750_v11, 8.507059e+37  ;;  %v753_v3 = vor.u32 1.1754944e-38, %v752_v33  ;;  %vm718_vm11 = vweird.f32 %v2025_v60 }
 0x223   : > { %v716_v15 = vmul.f32 %v1305_v12, %v715_v45  ;;  %v689_v48 = vadd.f32 %v1301_v7, %v688_v44  ;;  %781 = vst [vmem:[%s1832_s26 + $0x50] sm:$0xff] %v765_v52  ;;  %vm695_vm14 = vcmp.eq.f32.partialorder %v694_v40, 8.507059e+37  ;;  %v725_v63 = vor.u32 1.1754944e-38, %v724_v34  ;;  %vm720_vm15 = vmor %vm718_vm11, %vm719_vm9 }
 0x224   : > { %v1307_v51 = vpop.eup %1306  ;;  %v745_v53 = vadd.f32 %v1303_v25, %v744_v1  ;;  %792 = vxpose.xlu2.b32.cont [6/16] %v1940_v18, 128  ;;  %783 = vst [vmem:[%s1832_s26 + $0x60] sm:$0xff] %v767_v2  ;;  %vm723_vm0 = vcmp.eq.f32.partialorder %v722_v46, 8.507059e+37  ;;  %v738_v18 = vand.u32 2147483648, %v2072_v31  ;;  %v736_v13 = vand.u32 2147483647, %v2072_v31 }
 0x225   : > { %v728_v20 = vmul.f32 %v1307_v51, %v2072_v31  ;;  %v693_v35 = vsel %vm692_vm12, %v1301_v7, %v689_v48  ;;  %v717_v62 = vadd.f32 %v1305_v12, %v716_v15  ;;  %vm733_vm1 = vweird.f32 %v1307_v51 }
 0x226   : > { %v698_v60 = vsel %vm695_vm14, %v697_v9, %v693_v35  ;;  %v749_v55 = vsel %vm2115_vm13, %v1303_v25, %v745_v53  ;;  %vm732_vm2 = vweird.f32 %v2072_v31  ;;  %vm737_vm4 = vcmp.eq.f32.partialorder %v736_v13, 8.507059e+37 }
 0x227   : > { %v729_v57 = vsub.f32 1.0, %v728_v20  ;;  %v766_v0 = vmul.f32 %v1820_v28, %v698_v60  ;;  %v721_v4 = vsel %vm720_vm15, %v1305_v12, %v717_v62  ;;  %v754_v5 = vsel %vm2104_vm10, %v753_v3, %v749_v55  ;;  %vm734_vm3 = vmor %vm732_vm2, %vm733_vm1 }
 0x228   : > { %v726_v6 = vsel %vm723_vm0, %v725_v63, %v721_v4  ;;  %v770_v8 = vmul.f32 %v1818_v27, %v754_v5  ;;  %v739_v28 = vor.u32 1.1754944e-38, %v738_v18 }
 0x229   : > { %v730_v49 = vmul.f32 %v1307_v51, %v729_v57  ;;  %782 = vst [vmem:[%s1832_s26 + $0x58] sm:$0xff] %v766_v0  ;;  %v768_v14 = vmul.f32 %v1822_v29, %v726_v6 }
 0x22a   : > { %786 = vst [vmem:[%s1832_s26 + $0x78] sm:$0xff] %v770_v8 }
 0x22b   : > { %v731_v39 = vadd.f32 %v1307_v51, %v730_v49  ;;  %784 = vst [vmem:[%s1832_s26 + $0x68] sm:$0xff] %v768_v14 }
 0x22c   : > { %793 = vxpose.xlu2.b32.cont [7/16] %v1982_v42, 128 }
 0x22d   : > { %v735_v56 = vsel %vm734_vm3, %v1307_v51, %v731_v39 }
 0x22e   : > { %v740_v27 = vsel %vm737_vm4, %v739_v28, %v735_v56 }
 0x22f   : > { %v769_v61 = vmul.f32 %v1827_v30, %v740_v27 }
 0x231   : > { %785 = vst [vmem:[%s1832_s26 + $0x70] sm:$0xff] %v769_v61 }
 0x234   : > { %794 = vxpose.xlu2.b32.cont [8/16] %v1994_v10, 128 }
 0x23c   : > { %795 = vxpose.xlu2.b32.cont [9/16] %v2007_v54, 128 }
 0x244   : > { %796 = vxpose.xlu2.b32.cont [10/16] %v2062_v50, 128 }
 0x24c   : > { %797 = vxpose.xlu2.b32.cont [11/16] %v765_v52, 128 }
 0x254   : > { %798 = vxpose.xlu2.b32.cont [12/16] %v766_v0, 128 }
 0x25c   : > { %799 = vxpose.xlu2.b32.cont [13/16] %v767_v2, 128 }
 0x264   : > { %800 = vxpose.xlu2.b32.cont [14/16] %v768_v14, 128 }
 0x26c   : > { %801 = vxpose.xlu2.b32.cont [15/16] %v769_v61, 128 }
 0x274   : > { %802 = vxpose.xlu2.b32.end [16/16] %v770_v8, 128 }
 0x295   : > { %v803_v29 = vpop.trf.xlu2 }
 0x296   : > { %835 = vmatmul.f32.vlgmr.msrb.gmra.mxu0 %v803_v29 }
 0x29d   : > { %v804_v16 = vpop.trf.xlu2 }
 0x29e   : > { %838 = vmatmul.f32.gmra.mxu0 %v804_v16 }
 0x2a5   : > { %v805_v42 = vpop.trf.xlu2 }
 0x2a6   : > { %841 = vmatmul.f32.vlgmr.msra.gmra.mxu1 %v805_v42 }
 0x2ad   : > { %v806_v30 = vpop.trf.xlu2 }
 0x2ae   : > { %844 = vmatmul.f32.gmra.mxu1 %v806_v30 }
 0x2b5   : > { %v807_v17 = vpop.trf.xlu2 }
 0x2b6   : > { %847 = vmatmul.f32.gmra.mxu1 %v807_v17 }
 0x2bd   : > { %v808_v10 = vpop.trf.xlu2 }
 0x2be   : > { %850 = vmatmul.f32.gmra.mxu1 %v808_v10 }
 0x2c5   : > { %v809_v54 = vpop.trf.xlu2 }
 0x2c6   : > { %853 = vmatmul.f32.gmra.mxu1 %v809_v54 }
 0x2cd   : > { %v810_v50 = vpop.trf.xlu2 }
 0x2ce   : > { %856 = vmatmul.f32.gmra.mxu1 %v810_v50 }
 0x2d5   : > { %v811_v7 = vpop.trf.xlu2 }
 0x2d6   : > { %859 = vmatmul.f32.gmra.mxu1 %v811_v7 }
 0x2dd   : > { %v812_v19 = vpop.trf.xlu2 }
 0x2de   : > { %862 = vmatmul.f32.gmra.mxu1 %v812_v19 }
 0x2e5   : > { %v813_v21 = vpop.trf.xlu2 }
 0x2e6   : > { %865 = vmatmul.f32.gmra.mxu1 %v813_v21 }
 0x2ed   : > { %v814_v23 = vpop.trf.xlu2 }
 0x2ee   : > { %868 = vmatmul.f32.gmra.mxu1 %v814_v23 }
 0x2f5   : > { %v815_v25 = vpop.trf.xlu2 }
 0x2f6   : > { %871 = vmatmul.f32.gmra.mxu1 %v815_v25 }
 0x2fd   : > { %v816_v58 = vpop.trf.xlu2 }
 0x2fe   : > { %874 = vmatmul.f32.vlgmr.msrb.gmra.mxu3 %v816_v58 }
 0x305   : > { %v817_v9 = vpop.trf.xlu2 }
 0x306   : > { %877 = vmatmul.f32.gmra.mxu3 %v817_v9 }
 0x30d   : > { %v818_v11 = vpop.trf.xlu2 }
 0x30e   : > { %880 = vmatmul.f32.gmra.mxu3 %v818_v11 }
 0x313   : > { %v836_v31 = vpop.f32.mrf.mxu0 }
 0x314   : > { %884 = vst [vmem:[%s2144_s5] sm:$0xff] %v836_v31 }
 0x315   : > { %1395 = shalt.err (!%p1392_p0)
}
 0x316   : > { %s1491_s24 = smov 128   ;;  %s1492_s26 = smov 8  }
 0x317   : > { %1167 = dma.vmem_to_hbm [thread:$0]  (%p1603_p5), %s938_s28, 2048, %s940_s29, %s906_s30, %s1491_s24, %s1491_s24, %s1492_s26  }
 0x318   : > { %s917_s23 = scalar_lea.hbm %s2229_s3, %s1092_s8  ;;  %s918_s28 = sshll.u32 %s2144_s5, 4  ;;  %s919_s28 = int_to_ptr.vmem [resolvable:$true] %s918_s28 }
 0x319   : > { %s920_s29 = sshll.u32 %s917_s23, 4  ;;  %s901_s30 = scalar_lea.sflag [#allocation5], %s1626_s11  ;;  %s921_s29 = int_to_ptr.hbm [resolvable:$true] %s920_s29 }
 0x31a   : > { %s1410_s6 = sshra.s32 %s921_s29, 4  ;;  %s1416_s14 = scalar_lea.hbm %s2229_s3, 256  ;;  %s1411_s6 = int_to_ptr.hbm [resolvable:$true] %s1410_s6 }
 0x31b   : > { %v839_v12 = vpop.f32.mrf.mxu0  ;;  %s1412_s7 = scalar_lea.hbm %s1411_s6, 128  ;;  %p1417_p2 = scmp.lt.s32.totalorder %s1411_s6, %s2229_s3 }
 0x31c   : > { %885 = vst [vmem:[%s2144_s5 + $0x8] sm:$0xff] %v839_v12  ;;  %p1413_p3 = scmp.ne.s32.totalorder %s1411_s6, %s1412_s7  ;;  %p1418_p1 = scmp.lt.s32.totalorder %s1416_s14, %s1412_s7 }
 0x31e   : > { %p1414_p7 = pnand %p1413_p3, %p1603_p5  ;;  %p1419_p4 = por %p1418_p1, %p1417_p2 }
 0x320   : > { %p1415_p9 = pneg %p1414_p7 }
 0x322   : > { %p1420_p8 = pnand %p1419_p4, %p1415_p9 }
 0x323   : > { %v842_v32 = vpop.f32.mrf.mxu1 }
 0x324   : > { %886 = vst [vmem:[%s2144_s5 + $0x10] sm:$0xff] %v842_v32 }
 0x32b   : > { %v845_v33 = vpop.f32.mrf.mxu1 }
 0x32c   : > { %887 = vst [vmem:[%s2144_s5 + $0x18] sm:$0xff] %v845_v33 }
 0x333   : > { %v848_v34 = vpop.f32.mrf.mxu1 }
 0x334   : > { %888 = vst [vmem:[%s2144_s5 + $0x20] sm:$0xff] %v848_v34 }
 0x33b   : > { %v851_v36 = vpop.f32.mrf.mxu1 }
 0x33c   : > { %889 = vst [vmem:[%s2144_s5 + $0x28] sm:$0xff] %v851_v36 }
 0x343   : > { %v854_v37 = vpop.f32.mrf.mxu1 }
 0x344   : > { %890 = vst [vmem:[%s2144_s5 + $0x30] sm:$0xff] %v854_v37 }
 0x34b   : > { %v857_v38 = vpop.f32.mrf.mxu1 }
 0x34c   : > { %891 = vst [vmem:[%s2144_s5 + $0x38] sm:$0xff] %v857_v38 }
 0x353   : > { %v860_v40 = vpop.f32.mrf.mxu1 }
 0x354   : > { %892 = vst [vmem:[%s2144_s5 + $0x40] sm:$0xff] %v860_v40 }
 0x35b   : > { %v863_v41 = vpop.f32.mrf.mxu1 }
 0x35c   : > { %893 = vst [vmem:[%s2144_s5 + $0x48] sm:$0xff] %v863_v41 }
 0x363   : > { %v866_v43 = vpop.f32.mrf.mxu1 }
 0x364   : > { %894 = vst [vmem:[%s2144_s5 + $0x50] sm:$0xff] %v866_v43 }
 0x36b   : > { %v869_v26 = vpop.f32.mrf.mxu1 }
 0x36c   : > { %895 = vst [vmem:[%s2144_s5 + $0x58] sm:$0xff] %v869_v26 }
 0x373   : > { %v872_v44 = vpop.f32.mrf.mxu1 }
 0x374   : > { %896 = vst [vmem:[%s2144_s5 + $0x60] sm:$0xff] %v872_v44 }
 0x381   : > { %v875_v45 = vpop.f32.mrf.mxu3 }
 0x382   : > { %897 = vst [vmem:[%s2144_s5 + $0x68] sm:$0xff] %v875_v45 }
 0x389   : > { %v878_v46 = vpop.f32.mrf.mxu3 }
 0x38a   : > { %898 = vst [vmem:[%s2144_s5 + $0x70] sm:$0xff] %v878_v46 }
 0x391   : > { %v881_v1 = vpop.f32.mrf.mxu3 }
 0x392   : > { %899 = vst [vmem:[%s2144_s5 + $0x78] sm:$0xff] %v881_v1 }
 0x393   : > { %1423 = shalt.err (!%p1420_p8)
}
 0x394   : > { %1166 = dma.vmem_to_hbm [thread:$0]  (%p1603_p5), %s919_s28, 2048, %s921_s29, %s901_s30, %s1491_s24, %s1491_s24, %s1492_s26  }
 0x395 PF: > { %s954_s11 = sand.u32 1, %s1466_s17   ;;  %p1179_p10 = pnand %p1074_p11, %p1570_p6 }
 0x396   : > { %s955_s5 = scalar_lea.sflag [#allocation5], %s954_s11 }
 0x397   : > { %p1180_p12 = pneg %p1179_p10 }
 0x399   : > { %1457 = dma.done.wait (%p1180_p12), %s955_s5, 2048  }
 0x39a   : > { %1459 = vsyncadd (%p1180_p12), %s955_s5, 4294965248  ;;  %s965_s12 = scalar_lea.sflag [#allocation10], %s954_s11 }
 0x39b   : > { %1461 = dma.done.wait (%p1180_p12), %s965_s12, 2048  }
 0x39c   : > { %1463 = vsyncadd (%p1180_p12), %s965_s12, 4294965248  ;;  %s26_s22 = sadd.s32 1, %s1486_s22   ;;  %s2266_s17 = smov %s1470_s18 }
 0x39d   : > { %p23_p13 = scmp.ge.s32.totalorder %s26_s22, 4   ;;  %s2267_s18 = smov %s1474_s19 }
 0x39e   : > { %s2268_s19 = smov %s1612_s0  ;;  %s2269_s20 = smov %s1482_s21 }
 0x39f   : > { %s2270_s21 = smov %s2272_s10  ;;  %25 = sbr.rel (!%p23_p13) target bundleno = 12 (0xc), region = 98 }
 0x3a4   :  { %971 = vsyncpa [#allocation4], 1 }
 0x3a5   :  { %973 = vsyncpa [#allocation4 + $0x1], 1 }
 0x3a6   :  { %974 = vsyncpa [#allocation7], 1 }
 0x3a7   :  { %975 = vsyncpa [#allocation5], 1 }
 0x3a8   :  { %977 = vsyncpa [#allocation5 + $0x1], 1 }
 0x3a9   :  { %978 = vsyncpa [#allocation10], 1 }
 0x3aa   :  { %980 = vsyncpa [#allocation10 + $0x1], 1 }

</bundles_post_ra>
